<compile_context>
chip_gen: v7x
topology: tpu7x:2x2x1
jax: 0.10.0
libtpu: 0.0.40
codegen_flags: <defaults>
</compile_context>

<pallas_src>
import functools

import jax
import jax.numpy as jnp
from jax import lax
from jax.experimental import pallas as pl
from jax.experimental.pallas import tpu as pltpu

EPS = 1e-5
AFFINE = True
# TODO(synk): subtract_last=True branch (uses x[:, -1] instead of mean) is not
# implemented; default RevIN config (subtract_last=False) is reproduced.


# ----------------------------------------------------------------------------
# Per-generation budgets
# ----------------------------------------------------------------------------
def _tpu_budget():
    """Returns (x_block_cap_bytes, vmem_limit_bytes, num_tensorcores)."""
    vmem = 64 << 20                      # conservative fallback (v7x per-TC VMEM)
    try:
        fn = getattr(pltpu, "get_tpu_info", None)
        if fn is not None:
            v = getattr(fn(), "vmem_capacity_bytes", None)
            if v:
                vmem = int(v)
    except Exception:
        pass
    if vmem >= (96 << 20):               # v5e / v6e class: 128 MiB VMEM, 1 TC
        return 8 << 20, 96 << 20, 1
    return 4 << 20, 44 << 20, 2          # v7x class (or unknown): safe everywhere


def _pick_bb(B, inst_bytes, block_cap_bytes, num_tc):
    """Batch instances packed per grid step: big enough to amortize the
    ~0.35us/step overhead, small enough that double-buffered in+out blocks fit
    the per-generation VMEM budget."""
    bb = max(1, min(B, block_cap_bytes // max(inst_bytes, 1)))
    if num_tc > 1 and B >= num_tc:
        # Multi-TensorCore chips (v7x): keep >= num_tc grid steps so every
        # core gets a share of the batch.
        bb = min(bb, max(1, B // num_tc))
    return bb
    # TODO(synk): if a single instance (L*C*P) ever exceeds the block cap,
    # additionally tile L with an "arbitrary" reduction axis.


# ----------------------------------------------------------------------------
# In-kernel helpers
# ----------------------------------------------------------------------------
def _expand_lanes(v, C, P):
    """(bb, 1, C) per-feature values -> (bb, 1, C*P): each feature's value is
    repeated across its P contiguous patch lanes.  Tiny arrays; unrolled over
    the static feature count C."""
    bb = v.shape[0]
    return jnp.concatenate(
        [jnp.broadcast_to(v[:, :, c:c + 1], (bb, 1, P)) for c in range(C)],
        axis=-1)


# ----------------------------------------------------------------------------
# Kernels
# ----------------------------------------------------------------------------
def _revin_norm_kernel(x_ref, w_ref, b_ref, y_ref, mean_ref, std_ref, *,
                       C, P, affine):
    # x_ref: (bb, L, C*P) native lane-dense view; w_ref/b_ref: (1, 1, C)
    # mean_ref/std_ref: (bb, 1, C)
    bb, L, _ = x_ref.shape
    inv_n = 1.0 / float(L * P)

    xf = x_ref[...].astype(jnp.float32)                    # (bb, L, CP)

    # Fused single pass: per-lane sum and sum-of-squares over the L axis.
    s1 = jnp.sum(xf, axis=1, keepdims=True)                # (bb, 1, CP)
    s2 = jnp.sum(xf * xf, axis=1, keepdims=True)           # (bb, 1, CP)

    # Finish the per-feature reduction on the tiny partials: feature c owns
    # the contiguous lane group [c*P, (c+1)*P).  C is static -> unrolled.
    m_parts, q_parts = [], []
    for c in range(C):
        sl = slice(c * P, (c + 1) * P)
        m_parts.append(jnp.sum(s1[:, :, sl], axis=-1, keepdims=True))
        q_parts.append(jnp.sum(s2[:, :, sl], axis=-1, keepdims=True))
    s1c = jnp.concatenate(m_parts, axis=-1)                # (bb, 1, C)
    s2c = jnp.concatenate(q_parts, axis=-1)                # (bb, 1, C)

    mean = s1c * inv_n
    # Single-pass variance (unbiased=False); clamp guards cancellation.
    var = jnp.maximum(s2c * inv_n - mean * mean, 0.0)
    std = jnp.sqrt(var + EPS)
    inv_std = lax.rsqrt(var + EPS)                         # EUP; no divide

    if affine:
        scale = w_ref[...].astype(jnp.float32) * inv_std   # (bb, 1, C)
        shift = b_ref[...].astype(jnp.float32) - mean * scale
    else:
        scale = inv_std
        shift = -mean * inv_std

    scale_l = _expand_lanes(scale, C, P)                   # (bb, 1, CP)
    shift_l = _expand_lanes(shift, C, P)

    # Hot loop: one fused multiply-add per element, lane-dense stores.
    y_ref[...] = (xf * scale_l + shift_l).astype(y_ref.dtype)
    mean_ref[...] = mean
    std_ref[...] = std


def _revin_denorm_kernel(x_ref, w_ref, b_ref, mean_ref, std_ref, y_ref, *,
                         C, P, affine):
    # Inverse of norm: ((x - b) / (w + eps)) * std + mean, folded to x*s + t.
    std = std_ref[...].astype(jnp.float32)                 # (bb, 1, C)
    mean = mean_ref[...].astype(jnp.float32)
    if affine:
        w = w_ref[...].astype(jnp.float32)
        b = b_ref[...].astype(jnp.float32)
        scale = std / (w + EPS)                            # tiny per-feature divide
        shift = mean - b * scale
    else:
        scale = std
        shift = mean
    scale_l = _expand_lanes(scale, C, P)                   # (bb, 1, CP)
    shift_l = _expand_lanes(shift, C, P)
    y_ref[...] = (x_ref[...].astype(jnp.float32) * scale_l
                  + shift_l).astype(y_ref.dtype)


# ----------------------------------------------------------------------------
# Wrappers
# ----------------------------------------------------------------------------
def revin_norm(x, affine_weight, affine_bias):
    """RevIN forward, mode='norm'. Returns (y, mean, stdev) with stats shaped
    (B, 1, C, 1) like the PyTorch module (keepdim over dims 1 and 3)."""
    B, L, C, P = x.shape
    CP = C * P
    x3 = x.reshape(B, L, CP)                   # pure view, no HBM copy
    w3 = affine_weight.reshape(1, 1, C)
    b3 = affine_bias.reshape(1, 1, C)

    block_cap, vmem_limit, num_tc = _tpu_budget()
    bb = _pick_bb(B, L * CP * jnp.dtype(x.dtype).itemsize, block_cap, num_tc)
    grid = (pl.cdiv(B, bb),)

    x_spec = pl.BlockSpec((bb, L, CP), lambda i: (i, 0, 0))
    p_spec = pl.BlockSpec((1, 1, C), lambda i: (0, 0, 0))
    s_spec = pl.BlockSpec((bb, 1, C), lambda i: (i, 0, 0))

    kernel = functools.partial(_revin_norm_kernel, C=C, P=P, affine=AFFINE)
    y3, mean, std = pl.pallas_call(
        kernel,
        out_shape=(
            jax.ShapeDtypeStruct((B, L, CP), x.dtype),
            jax.ShapeDtypeStruct((B, 1, C), jnp.float32),
            jax.ShapeDtypeStruct((B, 1, C), jnp.float32),
        ),
        grid_spec=pltpu.PrefetchScalarGridSpec(
            num_scalar_prefetch=0,
            grid=grid,
            in_specs=[x_spec, p_spec, p_spec],
            out_specs=[x_spec, s_spec, s_spec],
        ),
        compiler_params=pltpu.CompilerParams(
            dimension_semantics=("parallel",),
            vmem_limit_bytes=vmem_limit),
    )(x3, w3, b3)

    y = y3.reshape(B, L, C, P)                 # pure view
    return y, mean.reshape(B, 1, C, 1), std.reshape(B, 1, C, 1)


def revin_denorm(x, affine_weight, affine_bias, mean, std):
    """RevIN forward, mode='denorm'."""
    B, L, C, P = x.shape
    CP = C * P
    x3 = x.reshape(B, L, CP)                   # pure view
    w3 = affine_weight.reshape(1, 1, C)
    b3 = affine_bias.reshape(1, 1, C)
    m3 = mean.reshape(B, 1, C).astype(jnp.float32)
    s3 = std.reshape(B, 1, C).astype(jnp.float32)

    block_cap, vmem_limit, num_tc = _tpu_budget()
    bb = _pick_bb(B, L * CP * jnp.dtype(x.dtype).itemsize, block_cap, num_tc)
    grid = (pl.cdiv(B, bb),)

    x_spec = pl.BlockSpec((bb, L, CP), lambda i: (i, 0, 0))
    p_spec = pl.BlockSpec((1, 1, C), lambda i: (0, 0, 0))
    s_spec = pl.BlockSpec((bb, 1, C), lambda i: (i, 0, 0))

    kernel = functools.partial(_revin_denorm_kernel, C=C, P=P, affine=AFFINE)
    y3 = pl.pallas_call(
        kernel,
        out_shape=jax.ShapeDtypeStruct((B, L, CP), x.dtype),
        grid_spec=pltpu.PrefetchScalarGridSpec(
            num_scalar_prefetch=0,
            grid=grid,
            in_specs=[x_spec, p_spec, p_spec, s_spec, s_spec],
            out_specs=x_spec,
        ),
        compiler_params=pltpu.CompilerParams(
            dimension_semantics=("parallel",),
            vmem_limit_bytes=vmem_limit),
    )(x3, w3, b3, m3, s3)

    return y3.reshape(B, L, C, P)              # pure view


# ----------------------------------------------------------------------------
# Reference (plain JAX) for verification
# ----------------------------------------------------------------------------
def revin_norm_ref(x, w, b):
    xf = x.astype(jnp.float32)
    mean = jnp.mean(xf, axis=(1, 3), keepdims=True)
    var = jnp.var(xf, axis=(1, 3), keepdims=True)   # ddof=0 (unbiased=False)
    std = jnp.sqrt(var + EPS)
    y = (xf - mean) / std
    y = y * w.reshape(1, 1, -1, 1) + b.reshape(1, 1, -1, 1)
    return y.astype(x.dtype), mean, std


if __name__ == "__main__":
    key = jax.random.PRNGKey(0)
    B, L, C, P = 2, 8, 4, 16          # (batch, seq, num_features, patch)
    x = jax.random.normal(key, (B, L, C, P), dtype=jnp.float32) * 3.0 + 1.5

    # nn.Parameter init: ones / zeros for num_features=C
    affine_weight = jnp.ones((C,), dtype=jnp.float32)
    affine_bias = jnp.zeros((C,), dtype=jnp.float32)

    # mode='norm'
    y, mean, std = revin_norm(x, affine_weight, affine_bias)
    jax.block_until_ready(y)

    # correctness vs. plain-JAX reference
    y_ref, mean_ref, std_ref = revin_norm_ref(x, affine_weight, affine_bias)
    assert jnp.allclose(y, y_ref, atol=1e-4, rtol=1e-4)
    assert jnp.allclose(mean, mean_ref, atol=1e-5, rtol=1e-5)
    assert jnp.allclose(std, std_ref, atol=1e-5, rtol=1e-5)

    # mode='denorm' (round-trip recovers x up to the eps in the affine inverse)
    x_rec = revin_denorm(y, affine_weight, affine_bias, mean, std)
    jax.block_until_ready(x_rec)
    assert jnp.allclose(x_rec, x, atol=1e-3, rtol=1e-3)

    print("KERNEL_OK")
</pallas_src>

<mosaic_0001>
module attributes {stable_mosaic.version = 11 : i64} {
  func.func @_revin_norm_kernel(%arg0: i32, %arg1: memref<1x8x64xf32, #tpu.memory_space<vmem>>, %arg2: memref<1x1x4xf32, #tpu.memory_space<vmem>>, %arg3: memref<1x1x4xf32, #tpu.memory_space<vmem>>, %arg4: memref<1x8x64xf32, #tpu.memory_space<vmem>>, %arg5: memref<1x1x4xf32, #tpu.memory_space<vmem>>, %arg6: memref<1x1x4xf32, #tpu.memory_space<vmem>>) attributes {dimension_semantics = [#tpu.dimension_semantics<parallel>], iteration_bounds = array<i64: 2>, scalar_prefetch = 0 : i64, scratch_operands = 0 : i64, tpu.core_type = #tpu.core_type<tc>, window_params = [{transform_indices = @transform_0, window_bounds = array<i64: 1, 8, 64>}, {pipeline_mode = #tpu.pipeline_mode<synchronous>, transform_indices = @transform_1, window_bounds = array<i64: 1, 1, 4>}, {pipeline_mode = #tpu.pipeline_mode<synchronous>, transform_indices = @transform_2, window_bounds = array<i64: 1, 1, 4>}, {transform_indices = @transform_3, window_bounds = array<i64: 1, 8, 64>}, {transform_indices = @transform_4, window_bounds = array<i64: 1, 1, 4>}, {transform_indices = @transform_5, window_bounds = array<i64: 1, 1, 4>}]} {
    %c0 = arith.constant 0 : index
    %c0_0 = arith.constant 0 : index
    %c0_1 = arith.constant 0 : index
    %0 = vector.load %arg1[%c0, %c0_0, %c0_1] : memref<1x8x64xf32, #tpu.memory_space<vmem>>, vector<1x8x64xf32>
    %cst = arith.constant dense<0.000000e+00> : vector<1x64xf32>
    %1 = vector.multi_reduction <add>, %0, %cst [1] : vector<1x8x64xf32> to vector<1x64xf32>
    %2 = vector.shape_cast %1 : vector<1x64xf32> to vector<1x1x64xf32>
    %3 = arith.mulf %0, %0 : vector<1x8x64xf32>
    %cst_2 = arith.constant dense<0.000000e+00> : vector<1x64xf32>
    %4 = vector.multi_reduction <add>, %3, %cst_2 [1] : vector<1x8x64xf32> to vector<1x64xf32>
    %5 = vector.shape_cast %4 : vector<1x64xf32> to vector<1x1x64xf32>
    %6 = vector.extract_strided_slice %2 {offsets = [0, 0, 0], sizes = [1, 1, 16], strides = [1, 1, 1]} : vector<1x1x64xf32> to vector<1x1x16xf32>
    %cst_3 = arith.constant dense<0.000000e+00> : vector<1x1xf32>
    %7 = vector.multi_reduction <add>, %6, %cst_3 [2] : vector<1x1x16xf32> to vector<1x1xf32>
    %8 = vector.shape_cast %7 : vector<1x1xf32> to vector<1x1x1xf32>
    %9 = vector.extract_strided_slice %5 {offsets = [0, 0, 0], sizes = [1, 1, 16], strides = [1, 1, 1]} : vector<1x1x64xf32> to vector<1x1x16xf32>
    %cst_4 = arith.constant dense<0.000000e+00> : vector<1x1xf32>
    %10 = vector.multi_reduction <add>, %9, %cst_4 [2] : vector<1x1x16xf32> to vector<1x1xf32>
    %11 = vector.shape_cast %10 : vector<1x1xf32> to vector<1x1x1xf32>
    %12 = vector.extract_strided_slice %2 {offsets = [0, 0, 16], sizes = [1, 1, 16], strides = [1, 1, 1]} : vector<1x1x64xf32> to vector<1x1x16xf32>
    %cst_5 = arith.constant dense<0.000000e+00> : vector<1x1xf32>
    %13 = vector.multi_reduction <add>, %12, %cst_5 [2] : vector<1x1x16xf32> to vector<1x1xf32>
    %14 = vector.shape_cast %13 : vector<1x1xf32> to vector<1x1x1xf32>
    %15 = vector.extract_strided_slice %5 {offsets = [0, 0, 16], sizes = [1, 1, 16], strides = [1, 1, 1]} : vector<1x1x64xf32> to vector<1x1x16xf32>
    %cst_6 = arith.constant dense<0.000000e+00> : vector<1x1xf32>
    %16 = vector.multi_reduction <add>, %15, %cst_6 [2] : vector<1x1x16xf32> to vector<1x1xf32>
    %17 = vector.shape_cast %16 : vector<1x1xf32> to vector<1x1x1xf32>
    %18 = vector.extract_strided_slice %2 {offsets = [0, 0, 32], sizes = [1, 1, 16], strides = [1, 1, 1]} : vector<1x1x64xf32> to vector<1x1x16xf32>
    %cst_7 = arith.constant dense<0.000000e+00> : vector<1x1xf32>
    %19 = vector.multi_reduction <add>, %18, %cst_7 [2] : vector<1x1x16xf32> to vector<1x1xf32>
    %20 = vector.shape_cast %19 : vector<1x1xf32> to vector<1x1x1xf32>
    %21 = vector.extract_strided_slice %5 {offsets = [0, 0, 32], sizes = [1, 1, 16], strides = [1, 1, 1]} : vector<1x1x64xf32> to vector<1x1x16xf32>
    %cst_8 = arith.constant dense<0.000000e+00> : vector<1x1xf32>
    %22 = vector.multi_reduction <add>, %21, %cst_8 [2] : vector<1x1x16xf32> to vector<1x1xf32>
    %23 = vector.shape_cast %22 : vector<1x1xf32> to vector<1x1x1xf32>
    %24 = vector.extract_strided_slice %2 {offsets = [0, 0, 48], sizes = [1, 1, 16], strides = [1, 1, 1]} : vector<1x1x64xf32> to vector<1x1x16xf32>
    %cst_9 = arith.constant dense<0.000000e+00> : vector<1x1xf32>
    %25 = vector.multi_reduction <add>, %24, %cst_9 [2] : vector<1x1x16xf32> to vector<1x1xf32>
    %26 = vector.shape_cast %25 : vector<1x1xf32> to vector<1x1x1xf32>
    %27 = vector.extract_strided_slice %5 {offsets = [0, 0, 48], sizes = [1, 1, 16], strides = [1, 1, 1]} : vector<1x1x64xf32> to vector<1x1x16xf32>
    %cst_10 = arith.constant dense<0.000000e+00> : vector<1x1xf32>
    %28 = vector.multi_reduction <add>, %27, %cst_10 [2] : vector<1x1x16xf32> to vector<1x1xf32>
    %29 = vector.shape_cast %28 : vector<1x1xf32> to vector<1x1x1xf32>
    %30 = tpu.concatenate %8, %14, %20, %26 in 2 : vector<1x1x1xf32>, vector<1x1x1xf32>, vector<1x1x1xf32>, vector<1x1x1xf32> -> vector<1x1x4xf32>
    %31 = tpu.concatenate %11, %17, %23, %29 in 2 : vector<1x1x1xf32>, vector<1x1x1xf32>, vector<1x1x1xf32>, vector<1x1x1xf32> -> vector<1x1x4xf32>
    %cst_11 = arith.constant 7.812500e-03 : f32
    %32 = vector.broadcast %cst_11 : f32 to vector<1x1x4xf32>
    %33 = arith.mulf %30, %32 : vector<1x1x4xf32>
    %cst_12 = arith.constant 7.812500e-03 : f32
    %34 = vector.broadcast %cst_12 : f32 to vector<1x1x4xf32>
    %35 = arith.mulf %31, %34 : vector<1x1x4xf32>
    %36 = arith.mulf %33, %33 : vector<1x1x4xf32>
    %37 = arith.subf %35, %36 : vector<1x1x4xf32>
    %cst_13 = arith.constant 0.000000e+00 : f32
    %38 = vector.broadcast %cst_13 : f32 to vector<1x1x4xf32>
    %39 = arith.maximumf %37, %38 : vector<1x1x4xf32>
    %cst_14 = arith.constant 9.99999974E-6 : f32
    %40 = vector.broadcast %cst_14 : f32 to vector<1x1x4xf32>
    %41 = arith.addf %39, %40 : vector<1x1x4xf32>
    %42 = math.sqrt %41 : vector<1x1x4xf32>
    %cst_15 = arith.constant 9.99999974E-6 : f32
    %43 = vector.broadcast %cst_15 : f32 to vector<1x1x4xf32>
    %44 = arith.addf %39, %43 : vector<1x1x4xf32>
    %45 = math.rsqrt %44 : vector<1x1x4xf32>
    %c0_16 = arith.constant 0 : index
    %c0_17 = arith.constant 0 : index
    %c0_18 = arith.constant 0 : index
    %46 = vector.load %arg2[%c0_16, %c0_17, %c0_18] : memref<1x1x4xf32, #tpu.memory_space<vmem>>, vector<1x1x4xf32>
    %47 = arith.mulf %46, %45 : vector<1x1x4xf32>
    %c0_19 = arith.constant 0 : index
    %c0_20 = arith.constant 0 : index
    %c0_21 = arith.constant 0 : index
    %48 = vector.load %arg3[%c0_19, %c0_20, %c0_21] : memref<1x1x4xf32, #tpu.memory_space<vmem>>, vector<1x1x4xf32>
    %49 = arith.mulf %33, %47 : vector<1x1x4xf32>
    %50 = arith.subf %48, %49 : vector<1x1x4xf32>
    %51 = vector.extract_strided_slice %47 {offsets = [0, 0, 0], sizes = [1, 1, 1], strides = [1, 1, 1]} : vector<1x1x4xf32> to vector<1x1x1xf32>
    %52 = vector.shape_cast %51 : vector<1x1x1xf32> to vector<1x1x1xf32>
    %53 = vector.broadcast %52 : vector<1x1x1xf32> to vector<1x1x16xf32>
    %54 = vector.extract_strided_slice %47 {offsets = [0, 0, 1], sizes = [1, 1, 1], strides = [1, 1, 1]} : vector<1x1x4xf32> to vector<1x1x1xf32>
    %55 = vector.shape_cast %54 : vector<1x1x1xf32> to vector<1x1x1xf32>
    %56 = vector.broadcast %55 : vector<1x1x1xf32> to vector<1x1x16xf32>
    %57 = vector.extract_strided_slice %47 {offsets = [0, 0, 2], sizes = [1, 1, 1], strides = [1, 1, 1]} : vector<1x1x4xf32> to vector<1x1x1xf32>
    %58 = vector.shape_cast %57 : vector<1x1x1xf32> to vector<1x1x1xf32>
    %59 = vector.broadcast %58 : vector<1x1x1xf32> to vector<1x1x16xf32>
    %60 = vector.extract_strided_slice %47 {offsets = [0, 0, 3], sizes = [1, 1, 1], strides = [1, 1, 1]} : vector<1x1x4xf32> to vector<1x1x1xf32>
    %61 = vector.shape_cast %60 : vector<1x1x1xf32> to vector<1x1x1xf32>
    %62 = vector.broadcast %61 : vector<1x1x1xf32> to vector<1x1x16xf32>
    %63 = tpu.concatenate %53, %56, %59, %62 in 2 : vector<1x1x16xf32>, vector<1x1x16xf32>, vector<1x1x16xf32>, vector<1x1x16xf32> -> vector<1x1x64xf32>
    %64 = vector.extract_strided_slice %50 {offsets = [0, 0, 0], sizes = [1, 1, 1], strides = [1, 1, 1]} : vector<1x1x4xf32> to vector<1x1x1xf32>
    %65 = vector.shape_cast %64 : vector<1x1x1xf32> to vector<1x1x1xf32>
    %66 = vector.broadcast %65 : vector<1x1x1xf32> to vector<1x1x16xf32>
    %67 = vector.extract_strided_slice %50 {offsets = [0, 0, 1], sizes = [1, 1, 1], strides = [1, 1, 1]} : vector<1x1x4xf32> to vector<1x1x1xf32>
    %68 = vector.shape_cast %67 : vector<1x1x1xf32> to vector<1x1x1xf32>
    %69 = vector.broadcast %68 : vector<1x1x1xf32> to vector<1x1x16xf32>
    %70 = vector.extract_strided_slice %50 {offsets = [0, 0, 2], sizes = [1, 1, 1], strides = [1, 1, 1]} : vector<1x1x4xf32> to vector<1x1x1xf32>
    %71 = vector.shape_cast %70 : vector<1x1x1xf32> to vector<1x1x1xf32>
    %72 = vector.broadcast %71 : vector<1x1x1xf32> to vector<1x1x16xf32>
    %73 = vector.extract_strided_slice %50 {offsets = [0, 0, 3], sizes = [1, 1, 1], strides = [1, 1, 1]} : vector<1x1x4xf32> to vector<1x1x1xf32>
    %74 = vector.shape_cast %73 : vector<1x1x1xf32> to vector<1x1x1xf32>
    %75 = vector.broadcast %74 : vector<1x1x1xf32> to vector<1x1x16xf32>
    %76 = tpu.concatenate %66, %69, %72, %75 in 2 : vector<1x1x16xf32>, vector<1x1x16xf32>, vector<1x1x16xf32>, vector<1x1x16xf32> -> vector<1x1x64xf32>
    %77 = vector.broadcast %63 : vector<1x1x64xf32> to vector<1x8x64xf32>
    %78 = arith.mulf %0, %77 : vector<1x8x64xf32>
    %79 = vector.broadcast %76 : vector<1x1x64xf32> to vector<1x8x64xf32>
    %80 = arith.addf %78, %79 : vector<1x8x64xf32>
    %c0_22 = arith.constant 0 : index
    %c0_23 = arith.constant 0 : index
    %c0_24 = arith.constant 0 : index
    %81 = vector.load %arg4[%c0_22, %c0_23, %c0_24] : memref<1x8x64xf32, #tpu.memory_space<vmem>>, vector<1x8x64xf32>
    tpu.vector_store %arg4[%c0_22, %c0_23, %c0_24], %80 {strides = array<i32>} : memref<1x8x64xf32, #tpu.memory_space<vmem>>, vector<1x8x64xf32>,
    %c0_25 = arith.constant 0 : index
    %c0_26 = arith.constant 0 : index
    %c0_27 = arith.constant 0 : index
    %82 = vector.load %arg5[%c0_25, %c0_26, %c0_27] : memref<1x1x4xf32, #tpu.memory_space<vmem>>, vector<1x1x4xf32>
    tpu.vector_store %arg5[%c0_25, %c0_26, %c0_27], %33 {strides = array<i32>} : memref<1x1x4xf32, #tpu.memory_space<vmem>>, vector<1x1x4xf32>,
    %c0_28 = arith.constant 0 : index
    %c0_29 = arith.constant 0 : index
    %c0_30 = arith.constant 0 : index
    %83 = vector.load %arg6[%c0_28, %c0_29, %c0_30] : memref<1x1x4xf32, #tpu.memory_space<vmem>>, vector<1x1x4xf32>
    tpu.vector_store %arg6[%c0_28, %c0_29, %c0_30], %42 {strides = array<i32>} : memref<1x1x4xf32, #tpu.memory_space<vmem>>, vector<1x1x4xf32>,
    return
  }
  func.func @transform_0(%arg0: i32) -> (i32, i32, i32) {
    %c0_i32 = arith.constant 0 : i32
    %c0_i32_0 = arith.constant 0 : i32
    %c0_i32_1 = arith.constant 0 : i32
    return %arg0, %c0_i32, %c0_i32_0 : i32, i32, i32
  }
  func.func @transform_1(%arg0: i32) -> (i32, i32, i32) {
    %c0_i32 = arith.constant 0 : i32
    %c0_i32_0 = arith.constant 0 : i32
    %c0_i32_1 = arith.constant 0 : i32
    %c0_i32_2 = arith.constant 0 : i32
    return %c0_i32, %c0_i32_0, %c0_i32_1 : i32, i32, i32
  }
  func.func @transform_2(%arg0: i32) -> (i32, i32, i32) {
    %c0_i32 = arith.constant 0 : i32
    %c0_i32_0 = arith.constant 0 : i32
    %c0_i32_1 = arith.constant 0 : i32
    %c0_i32_2 = arith.constant 0 : i32
    return %c0_i32, %c0_i32_0, %c0_i32_1 : i32, i32, i32
  }
  func.func @transform_3(%arg0: i32) -> (i32, i32, i32) {
    %c0_i32 = arith.constant 0 : i32
    %c0_i32_0 = arith.constant 0 : i32
    %c0_i32_1 = arith.constant 0 : i32
    return %arg0, %c0_i32, %c0_i32_0 : i32, i32, i32
  }
  func.func @transform_4(%arg0: i32) -> (i32, i32, i32) {
    %c0_i32 = arith.constant 0 : i32
    %c0_i32_0 = arith.constant 0 : i32
    %c0_i32_1 = arith.constant 0 : i32
    return %arg0, %c0_i32, %c0_i32_0 : i32, i32, i32
  }
  func.func @transform_5(%arg0: i32) -> (i32, i32, i32) {
    %c0_i32 = arith.constant 0 : i32
    %c0_i32_0 = arith.constant 0 : i32
    %c0_i32_1 = arith.constant 0 : i32
    return %arg0, %c0_i32, %c0_i32_0 : i32, i32, i32
  }
}

</mosaic_0001>

<bundles_post_ra>
// kernel: tpu_custom_call.1
= control target key start
LH: loop header
LB: loop body
LE: loop exit
PB: predicated region body
PF: predicated region fallthrough
CT: control target
= control target key end

     0   :  { %11 = vsyncpa [#allocation3], 0  ;;  %s1152_s0 = inlined_call_operand.hbm [shape: f32[2,8,64], index: 0, kind: input, shape index: {}]   ;;  %s1153_s1 = inlined_call_operand.vmem [shape: f32[1,1,4], index: 1, kind: input, shape index: {}]   ;;  %s1154_s2 = inlined_call_operand.vmem [shape: f32[1,1,4], index: 2, kind: input, shape index: {}]   ;;  %s1155_s3 = inlined_call_operand.hbm [shape: f32[2,8,64], index: 3, kind: output, shape index: {0}]   ;;  %s1156_s4 = inlined_call_operand.hbm [shape: f32[2,1,4], index: 4, kind: output, shape index: {1}]   ;;  %s1157_s5 = inlined_call_operand.hbm [shape: f32[2,1,4], index: 5, kind: output, shape index: {2}]  }
   0x1   :  { %13 = vsyncpa [#allocation3 + $0x1], 0 }
   0x2   :  { %14 = vsyncpa [#allocation4], 0 }
   0x3   :  { %16 = vsyncpa [#allocation4 + $0x1], 0 }
   0x4   :  { %17 = vsyncpa [#allocation7], 0 }
   0x5   :  { %19 = vsyncpa [#allocation7 + $0x1], 0  ;;  %s892_s18 = smov 0   ;;  %s894_s19 = smov 0  }
   0x6   :  { %s896_s20 = smov 0   ;;  %s898_s21 = smov 0  }
   0x7 LB: > { %s913_s22 = sadd.s32 4294967295, %s849_s21   ;;  %s605_s23 = sadd.s32 4294967294, %s849_s21   ;;  %s849_s21 = sphi %s898_s21, %s1172_s21   ;;  %s845_s20 = sphi %s896_s20, %s1171_s20   ;;  %s841_s19 = sphi %s894_s19, %s1170_s19   ;;  %s837_s18 = sphi %s892_s18, %s1169_s18  }
   0x8   : > { %s917_s24 = sadd.s32 1, %s849_s21   ;;  %s32_s25 = sadd.s32 1, %s845_s20 }
   0x9   : > { %s29_s26 = ssub.s32 %s849_s21, %s917_s24  ;;  %p39_p0 = scmp.ne.s32.totalorder %s845_s20, %s841_s19 }
   0xa   : > { %p30_p1 = scmp.eq.s32.totalorder %s29_s26, 0  ;;  %p40_p2 = scmp.eq.s32.totalorder %s849_s21, 0 }
   0xb   : > { %p45_p3 = scmp.ne.s32.totalorder %s841_s19, %s837_s18  ;;  %p46_p4 = scmp.eq.s32.totalorder %s913_s22, 0 }
   0xc   : > { %s929_s27 = scalar_select %p30_p1, %s845_s20, %s32_s25  }
   0xd   : > { %p931_p5 = por %p40_p2, %p39_p0  ;;  %p935_p6 = por %p46_p4, %p45_p3 }
   0xe   : > { %p111_p7 = scmp.eq.s32.totalorder %s913_s22, 1  ;;  %p117_p8 = scmp.eq.s32.totalorder %s605_s23, 1 }
   0xf   : > { %p641_p10 = scmp.lt.s32.totalorder %s849_s21, 2  ;;  %s195_s7 = sand.u32 1, %s845_s20  }
  0x10   : > { %p944_p11 = por %p111_p7, %p39_p0  ;;  %p948_p12 = por %p117_p8, %p45_p3 }
  0x11   : > { %s609_s8 = sshll.u32 %s849_s21, 7  ;;  %s608_s9 = sshll.u32 %s195_s7, 3 }
  0x12   : > { %s1161_s30 = scalar_select %p944_p11, 1, 0 }
  0x13   : > { %s1162_s6 = scalar_select %p948_p12, 1, 0 }
  0x14   : > { %s957_s12 = scalar_lea.hbm %s1152_s0, %s609_s8  ;;  %s199_s13 = scalar_lea.vmem [#allocation2], %s608_s9 }
  0x15   : > { %s206_s14 = sshll.u32 %s199_s13, 4  ;;  %p961_p13 = pnand %p641_p10, %p931_p5  ;;  %s965_s14 = int_to_ptr.vmem [resolvable:$true] %s206_s14 }
  0x16   : > { %s196_s16 = scalar_lea.sflag [#allocation3], %s195_s7  ;;  %s693_s17 = scalar_lea.hbm %s957_s12, 128 }
  0x17   : > { %p694_p2 = scmp.ne.s32.totalorder %s957_s12, %s693_s17  ;;  %p695_p3 = pneg %p961_p13 }
  0x18   : > { %s698_s28 = scalar_lea.hbm %s1152_s0, 256  ;;  %p699_p5 = scmp.lt.u32.totalorder %s957_s12, %s1152_s0 }
  0x19   : > { %p696_p4 = pnand %p695_p3, %p694_p2  ;;  %p700_p8 = scmp.lt.u32.totalorder %s698_s28, %s693_s17 }
  0x1a   : > { %p702_p9 = scmp.lt.u32.totalorder %s693_s17, %s957_s12 }
  0x1b   : > { %p697_p7 = pneg %p696_p4  ;;  %p701_p10 = por %p700_p8, %p699_p5 }
  0x1d   : > { %p703_p0 = por %p702_p9, %p701_p10 }
  0x1f   : > { %p704_p1 = pnand %p703_p0, %p697_p7 }
  0x21   : > { %707 = shalt.err (!%p704_p1)
}
  0x22   : > { %s708_s7 = scalar_lea.vmem %s965_s14, 128  ;;  %s851_s10 = smov [#allocation2]  }
  0x23   : > { %p709_p2 = scmp.ne.s32.totalorder %s965_s14, %s708_s7  ;;  %s713_s11 = sshll.u32 %s851_s10, 4  ;;  %s714_s11 = int_to_ptr.vmem [resolvable:$false] %s713_s11 }
  0x24   : > { %s715_s13 = scalar_lea.vmem %s714_s11, 256  ;;  %p716_p11 = scmp.lt.s32.totalorder %s965_s14, %s714_s11 }
  0x25   : > { %p711_p4 = pnand %p709_p2, %p695_p3  ;;  %p717_p5 = scmp.lt.s32.totalorder %s715_s13, %s708_s7 }
  0x27   : > { %p712_p12 = pneg %p711_p4  ;;  %p718_p8 = por %p717_p5, %p716_p11 }
  0x29   : > { %p719_p9 = pnand %p718_p8, %p712_p12 }
  0x2b   : > { %722 = shalt.err (!%p719_p9)
}
  0x2c   : > { %630 = dma.hbm_to_vmem [thread:$0]  (!%p961_p13), %s957_s12, 128, %s965_s14, %s196_s16  }
  0x2d   : > { %p1164_p0 = scmp.lt.s32.totalorder %s849_s21, 3  ;;  %p1165_p1 = scmp.ge.s32.totalorder %s849_s21, 1 }
  0x2f   : > { %p212_p3 = pnand %p1165_p1, %p1164_p0 }
  0x30   : > { %s999_s17 = sand.u32 (!%p212_p3), 1, %s841_s19  }
  0x31   : > { %215 = sbr.rel (%p212_p3) target bundleno = 542 (0x21e), region = 32  ;;  %s611_s25 = sshll.u32 (!%p212_p3), %s999_s17, 3 }
  0x32   : > { %s218_s26 = scalar_lea.sflag (!%p212_p3), [#allocation3], %s999_s17  ;;  %s221_s15 = scalar_lea.vmem (!%p212_p3), [#allocation2], %s611_s25 }
  0x38   : > { %824 = dma.done.wait (%p935_p6), %s218_s26, 128  }
  0x39   : > { %826 = vsyncadd (%p935_p6), %s218_s26, 4294967168  ;;  %vm257_vm0 = vcmask 523264   ;;  %v1009_v0 = vld [vmem:[%s221_s15] sm:$0xff]  ;;  %s852_s29 = smov 80   ;;  %s853_s12 = smov 112   ;;  %vm273_vm1 = vcmask 130048  }
  0x3a   : > { %v258_v1 = vsel %vm257_vm0, %v1009_v0, 0.0  ;;  %v265_v2 = vmul.f32 %v1009_v0, %v1009_v0  ;;  %s854_s14 = smov 96   ;;  %v855_v30 = vmov 1   ;;  %v856_v31 = vmov 0   ;;  %s249_s16 = scalar_lea.vmem [#allocation6], %s999_s17 }
  0x3b   : > { %v259_v3 = vrot.slane %v258_v1, 4  ;;  %683 = vset.pattern.permute.xlu0 %v855_v30  ;;  %682 = vset.pattern.permute.xlu1 %v856_v31  ;;  %vm318_vm2 = vcmask 7168   ;;  %vm320_vm3 = vcmask 15360   ;;  %vm322_vm4 = vcmask 23552   ;;  %v341_v52 = vld [vmem:[%s1153_s1] sm:$0x1] }
  0x3c   : > { %v266_v4 = vsel %vm257_vm0, %v265_v2, 0.0  ;;  %vm431_vm5 = vcmask 24576   ;;  %s255_s9 = scalar_lea.vmem [#allocation8], %s999_s17  ;;  %v857_v59 = vmov 2   ;;  %v858_v60 = vmov 3   ;;  %s439_s11 = sand.u32 1, %s913_s22  }
  0x3d   : > { %v260_v5 = vadd.f32 %v259_v3, %v258_v1  ;;  %v267_v6 = vrot.slane %v266_v4, 4  ;;  %v343_v62 = vld [vmem:[%s1154_s2] sm:$0x1]  ;;  %s615_s13 = sshll.u32 %s913_s22, 4  ;;  %p1166_p11 = scmp.ne.s32.totalorder %s1161_s30, 0 }
  0x3e   : > { %s859_s8 = smov [#allocation6]  }
  0x3f   : > { %v261_v7 = vrot.slane %v260_v5, 2  ;;  %v268_v8 = vadd.f32 %v267_v6, %v266_v4  ;;  %s727_s7 = sshll.u32 %s859_s8, 4  ;;  %s728_s7 = int_to_ptr.vmem [resolvable:$false] %s727_s7 }
  0x40   : > { %s729_s10 = scalar_lea.vmem %s728_s7, 32 }
  0x41   : > { %v262_v9 = vadd.f32 %v261_v7, %v260_v5  ;;  %v269_v10 = vrot.slane %v268_v8, 2 }
  0x43   : > { %v263_v11 = vrot.slane %v262_v9, 1  ;;  %v270_v12 = vadd.f32 %v269_v10, %v268_v8 }
  0x45   : > { %v264_v13 = vadd.f32 %v263_v11, %v262_v9  ;;  %v271_v14 = vrot.slane %v270_v12, 1 }
  0x47   : > { %306 = vrot.lane.b32.xlu1 %v264_v13, %s852_s29  ;;  %281 = vrot.lane.b32.xlu0 %v264_v13, %s853_s12  ;;  %v272_v15 = vadd.f32 %v271_v14, %v270_v12  ;;  %v274_v16 = vsel %vm273_vm1, %v264_v13, 0.0 }
  0x49   : > { %v277_v17 = vsel %vm273_vm1, %v272_v15, 0.0 }
  0x4b   : > { %288 = vrot.lane.b32.xlu1 %v272_v15, %s853_s12  ;;  %294 = vrot.lane.b32.xlu0 %v264_v13, %s854_s14  ;;  %s469_s12 = sshll.u32 %s249_s16, 4  ;;  %s470_s12 = int_to_ptr.vmem [resolvable:$true] %s469_s12 }
  0x4c   : > { %s723_s28 = scalar_lea.vmem %s470_s12, 16  ;;  %p730_p7 = scmp.lt.s32.totalorder %s470_s12, %s728_s7 }
  0x4d   : > { %p724_p6 = scmp.ne.s32.totalorder %s470_s12, %s723_s28  ;;  %p731_p10 = scmp.lt.s32.totalorder %s729_s10, %s723_s28 }
  0x4f   : > { %300 = vrot.lane.b32.xlu0 %v272_v15, %s854_s14  ;;  %312 = vrot.lane.b32.xlu1 %v272_v15, %s852_s29  ;;  %s1045_s29 = scalar_lea.hbm %s1156_s4, %s615_s13  ;;  %s1049_s14 = scalar_lea.sflag [#allocation7], %s439_s11 }
  0x50   : > { %p725_p12 = pnand %p724_p6, %p1166_p11  ;;  %p732_p2 = por %p731_p10, %p730_p7 }
  0x52   : > { %p726_p13 = pneg %p725_p12 }
  0x54   : > { %p733_p4 = pnand %p732_p2, %p726_p13 }
  0x6e   : > { %275 = vadd.xlane.f32.xlu0 %v274_v16 }
  0x73   : > { %278 = vadd.xlane.f32.xlu1 %v277_v17 }
  0xb9   : > { %v307_v18 = vpop.permute.xlu1 %306  ;;  %v282_v19 = vpop.permute.xlu0 %281 }
  0xba   : > { %v284_v20 = vsel %vm273_vm1, %v282_v19, 0.0  ;;  %v309_v27 = vsel %vm273_vm1, %v307_v18, 0.0 }
  0xbb   : > { %285 = vadd.xlane.f32.xlu0 %v284_v20 }
  0xbd   : > { %v289_v21 = vpop.permute.xlu1 %288  ;;  %v295_v22 = vpop.permute.xlu0 %294 }
  0xbe   : > { %v297_v23 = vsel %vm273_vm1, %v295_v22, 0.0  ;;  %v291_v24 = vsel %vm273_vm1, %v289_v21, 0.0 }
  0xbf   : > { %298 = vadd.xlane.f32.xlu1 %v297_v23  ;;  %292 = vadd.xlane.f32.xlu0 %v291_v24 }
  0xc1   : > { %v301_v25 = vpop.permute.xlu0 %300  ;;  %v313_v26 = vpop.permute.xlu1 %312 }
  0xc2   : > { %v303_v28 = vsel %vm273_vm1, %v301_v25, 0.0  ;;  %v315_v29 = vsel %vm273_vm1, %v313_v26, 0.0 }
  0xc3   : > { %310 = vadd.xlane.f32.xlu1 %v309_v27  ;;  %304 = vadd.xlane.f32.xlu0 %v303_v28 }
  0xc7   : > { %316 = vadd.xlane.f32.xlu0 %v315_v29 }
  0xfb   : > { %v276_v32 = vpop.xlane.xlu0 %275 }
 0x100   : > { %v279_v33 = vpop.xlane.xlu1 %278 }
 0x148   : > { %v286_v34 = vpop.xlane.xlu0 %285 }
 0x149   : > { %v319_v37 = vsel %vm318_vm2, %v276_v32, %v286_v34 }
 0x14c   : > { %v299_v35 = vpop.xlane.xlu1 %298  ;;  %v293_v36 = vpop.xlane.xlu0 %292 }
 0x14d   : > { %v321_v38 = vsel %vm320_vm3, %v319_v37, %v299_v35  ;;  %v324_v43 = vsel %vm318_vm2, %v279_v33, %v293_v36 }
 0x150   : > { %v311_v39 = vpop.xlane.xlu1 %310  ;;  %v305_v40 = vpop.xlane.xlu0 %304 }
 0x151   : > { %v323_v41 = vsel %vm322_vm4, %v321_v38, %v311_v39  ;;  %v325_v44 = vsel %vm320_vm3, %v324_v43, %v305_v40 }
 0x152   : > { %v327_v42 = vmul.f32 0.0078125, %v323_v41 }
 0x154   : > { %v317_v45 = vpop.xlane.xlu0 %316  ;;  %432 = vst.msk [vmem:[%s249_s16] sm:$0x1] %vm431_vm5, %v327_v42  ;;  %v329_v47 = vmul.f32 %v327_v42, %v327_v42 }
 0x155   : > { %v326_v46 = vsel %vm322_vm4, %v325_v44, %v317_v45 }
 0x156   : > { %v328_v48 = vmul.f32 0.0078125, %v326_v46 }
 0x158   : > { %v330_v49 = vsub.f32 %v328_v48, %v329_v47 }
 0x15a   : > { %v331_v50 = vmax.f32 %v330_v49, 0.0 }
 0x15c   : > { %v332_v51 = vadd.f32 1e-05, %v331_v50 }
 0x15e   : > { %691 = vrsqrt.f32 %v332_v51  ;;  %vm335_vm6 = vcmp.eq.f32.partialorder %v332_v51, inf  ;;  %v338_v56 = vand.u32 2147483648, %v332_v51  ;;  %vm337_vm7 = vcmp.eq.f32.partialorder %v332_v51, 0.0 }
 0x168   : > { %v692_v53 = vpop.eup %691 }
 0x169   : > { %v342_v54 = vmul.f32 %v692_v53, %v341_v52  ;;  %v334_v55 = vmul.f32 %v692_v53, %v332_v51 }
 0x16b   : > { %356 = vperm.xlu0 %683, %v342_v54   ;;  %348 = vperm.xlu1 %682, %v342_v54   ;;  %v336_v57 = vsel %vm335_vm6, %v332_v51, %v334_v55  ;;  %v344_v61 = vmul.f32 %v342_v54, %v327_v42 }
 0x16c   : > { %v339_v58 = vsel %vm337_vm7, %v338_v56, %v336_v57 }
 0x16d   : > { %433 = vst.msk [vmem:[%s255_s9] sm:$0x1] %vm431_vm5, %v339_v58  ;;  %v345_v63 = vsub.f32 %v343_v62, %v344_v61 }
 0x16f   : > { %684 = vset.pattern.permute.xlu1 %v857_v59  ;;  %690 = vset.pattern.permute.xlu0 %v858_v60 }
 0x170   : > { %364 = vperm.xlu1 %684, %v342_v54  }
 0x174   : > { %685 = vset.pattern.permute.xlu1 %v858_v60 }
 0x175   : > { %372 = vperm.xlu1 %685, %v342_v54  }
 0x179   : > { %686 = vset.pattern.permute.xlu1 %v856_v31 }
 0x17a   : > { %386 = vperm.xlu1 %686, %v345_v63  }
 0x17e   : > { %687 = vset.pattern.permute.xlu1 %v855_v30 }
 0x17f   : > { %394 = vperm.xlu1 %687, %v345_v63  }
 0x183   : > { %688 = vset.pattern.permute.xlu1 %v857_v59 }
 0x184   : > { %402 = vperm.xlu1 %688, %v345_v63  }
 0x188   : > { %689 = vset.pattern.permute.xlu1 %v858_v60 }
 0x189   : > { %410 = vperm.xlu1 %689, %v345_v63  }
 0x18a   : > { %736 = shalt.err (!%p733_p4)
}
 0x18b   : > { %s737_s16 = scalar_lea.hbm %s1045_s29, 16  ;;  %s741_s15 = scalar_lea.hbm %s1156_s4, 32 }
 0x18c   : > { %p738_p5 = scmp.ne.s32.totalorder %s1045_s29, %s737_s16  ;;  %p742_p0 = scmp.lt.u32.totalorder %s1045_s29, %s1156_s4 }
 0x18d   : > { %p743_p1 = scmp.lt.u32.totalorder %s741_s15, %s737_s16  ;;  %p745_p6 = scmp.lt.u32.totalorder %s737_s16, %s1045_s29 }
 0x18e   : > { %p739_p8 = pnand %p738_p5, %p1166_p11 }
 0x18f   : > { %p744_p3 = por %p743_p1, %p742_p0 }
 0x190   : > { %p740_p9 = pneg %p739_p8 }
 0x191   : > { %p746_p12 = por %p745_p6, %p744_p3 }
 0x193   : > { %p747_p13 = pnand %p746_p12, %p740_p9 }
 0x195   : > { %750 = shalt.err (!%p747_p13)
}
 0x196   : > { %622 = dma.vmem_to_hbm [thread:$0]  (%p1166_p11), %s470_s12, 16, %s1045_s29, %s1049_s14  }
 0x197   : > { %s1074_s11 = scalar_lea.hbm %s1157_s5, %s615_s13  ;;  %s482_s26 = sshll.u32 %s255_s9, 4  ;;  %s483_s26 = int_to_ptr.vmem [resolvable:$true] %s482_s26 }
 0x198   : > { %s751_s16 = scalar_lea.vmem %s483_s26, 16  ;;  %s860_s15 = smov [#allocation8]  }
 0x199   : > { %p752_p7 = scmp.ne.s32.totalorder %s483_s26, %s751_s16  ;;  %s755_s8 = sshll.u32 %s860_s15, 4  ;;  %s756_s8 = int_to_ptr.vmem [resolvable:$false] %s755_s8 }
 0x19a   : > { %s757_s7 = scalar_lea.vmem %s756_s8, 32  ;;  %p758_p4 = scmp.lt.s32.totalorder %s483_s26, %s756_s8 }
 0x19b   : > { %p753_p10 = pnand %p752_p7, %p1166_p11  ;;  %p759_p5 = scmp.lt.s32.totalorder %s757_s7, %s751_s16 }
 0x19d   : > { %p754_p2 = pneg %p753_p10  ;;  %p760_p8 = por %p759_p5, %p758_p4 }
 0x19f   : > { %p761_p9 = pnand %p760_p8, %p754_p2 }
 0x1a1   : > { %764 = shalt.err (!%p761_p9)
}
 0x1a2   : > { %s765_s9 = scalar_lea.hbm %s1074_s11, 16  ;;  %s769_s12 = scalar_lea.hbm %s1157_s5, 32 }
 0x1a3   : > { %p766_p0 = scmp.ne.s32.totalorder %s1074_s11, %s765_s9  ;;  %p770_p6 = scmp.lt.u32.totalorder %s1074_s11, %s1157_s5 }
 0x1a4   : > { %p771_p12 = scmp.lt.u32.totalorder %s769_s12, %s765_s9  ;;  %p773_p7 = scmp.lt.u32.totalorder %s765_s9, %s1074_s11 }
 0x1a5   : > { %p767_p1 = pnand %p766_p0, %p1166_p11 }
 0x1a6   : > { %p772_p13 = por %p771_p12, %p770_p6 }
 0x1a7   : > { %p768_p3 = pneg %p767_p1 }
 0x1a8   : > { %p774_p10 = por %p773_p7, %p772_p13 }
 0x1aa   : > { %p775_p2 = pnand %p774_p10, %p768_p3 }
 0x1ac   : > { %778 = shalt.err (!%p775_p2)
}
 0x1ad   : > { %623 = dma.vmem_to_hbm [thread:$0]  (%p1166_p11), %s483_s26, 16, %s1074_s11, %s1049_s14   ;;  %v351_v3 = vlaneseq  ;;  %vm380_vm8 = vcmask 261120   ;;  %vm382_vm9 = vcmask 392192  }
 0x1ae   : > { %s614_s14 = sshll.u32 %s913_s22, 7  ;;  %s243_s11 = scalar_lea.vmem [#allocation5], %s611_s25 }
 0x1af   : > { %v352_v5 = vshrl.u32 %v351_v3, 7  ;;  %s456_s26 = sshll.u32 %s243_s11, 4  ;;  %s1105_s8 = scalar_lea.hbm %s1155_s3, %s614_s14  ;;  %s1107_s26 = int_to_ptr.vmem [resolvable:$true] %s456_s26 }
 0x1b0   : > { %s435_s22 = scalar_lea.sflag [#allocation4], %s999_s17  ;;  %s779_s7 = scalar_lea.vmem %s1107_s26, 128 }
 0x1b1   : > { %v353_v7 = vsub.s32 0, %v352_v5  ;;  %p780_p4 = scmp.ne.s32.totalorder %s1107_s26, %s779_s7  ;;  %s861_s25 = smov [#allocation5]  }
 0x1b2   : > { %s783_s9 = sshll.u32 %s861_s25, 4  ;;  %s784_s9 = int_to_ptr.vmem [resolvable:$false] %s783_s9 }
 0x1b3   : > { %p781_p5 = pnand %p780_p4, %p1166_p11  ;;  %s785_s13 = scalar_lea.vmem %s784_s9, 256 }
 0x1b4   : > { %p786_p9 = scmp.lt.s32.totalorder %s1107_s26, %s784_s9  ;;  %p787_p0 = scmp.lt.s32.totalorder %s785_s13, %s779_s7 }
 0x1b5   : > { %p782_p8 = pneg %p781_p5 }
 0x1b6   : > { %p788_p1 = por %p787_p0, %p786_p9 }
 0x1b8   : > { %p789_p3 = pnand %p788_p1, %p782_p8 }
 0x1ea   : > { %v349_v1 = vpop.permute.xlu1 %348  ;;  %v357_v8 = vpop.permute.xlu0 %356 }
 0x1eb   : > { %v362_v10 = vrot.slane %v357_v8, %v353_v7  ;;  %v354_v11 = vrot.slane %v349_v1, %v353_v7 }
 0x1ed   : > { %v379_v14 = vsel %vm273_vm1, %v354_v11, %v362_v10 }
 0x1ef   : > { %v365_v2 = vpop.permute.xlu1 %364 }
 0x1f0   : > { %v370_v12 = vrot.slane %v365_v2, %v353_v7 }
 0x1f2   : > { %v381_v16 = vsel %vm380_vm8, %v379_v14, %v370_v12 }
 0x1f4   : > { %v373_v4 = vpop.permute.xlu1 %372 }
 0x1f5   : > { %v378_v13 = vrot.slane %v373_v4, %v353_v7 }
 0x1f7   : > { %v383_v17 = vsel %vm382_vm9, %v381_v16, %v378_v13 }
 0x1f8   : > { %v423_v21 = vrot.slane %v383_v17, %v353_v7 }
 0x1f9   : > { %v387_v6 = vpop.permute.xlu1 %386 }
 0x1fa   : > { %v392_v20 = vrot.slane %v387_v6, %v353_v7  ;;  %v424_v27 = vmul.f32 %v423_v21, %v1009_v0 }
 0x1fe   : > { %v395_v9 = vpop.permute.xlu1 %394 }
 0x1ff   : > { %v400_v18 = vrot.slane %v395_v9, %v353_v7 }
 0x201   : > { %v417_v23 = vsel %vm273_vm1, %v392_v20, %v400_v18 }
 0x203   : > { %v403_v15 = vpop.permute.xlu1 %402 }
 0x204   : > { %v408_v19 = vrot.slane %v403_v15, %v353_v7 }
 0x206   : > { %v418_v25 = vsel %vm380_vm8, %v417_v23, %v408_v19 }
 0x208   : > { %v411_v22 = vpop.permute.xlu1 %410 }
 0x209   : > { %v416_v24 = vrot.slane %v411_v22, %v353_v7 }
 0x20b   : > { %v419_v26 = vsel %vm382_vm9, %v418_v25, %v416_v24 }
 0x20c   : > { %v428_v28 = vrot.slane %v419_v26, %v353_v7 }
 0x20e   : > { %v429_v29 = vadd.f32 %v428_v28, %v424_v27 }
 0x210   : > { %430 = vst.msk [vmem:[%s243_s11] sm:$0xff] %vm257_vm0, %v429_v29 }
 0x211   : > { %792 = shalt.err (!%p789_p3)
}
 0x212   : > { %s793_s17 = scalar_lea.hbm %s1105_s8, 128  ;;  %s797_s28 = scalar_lea.hbm %s1155_s3, 256 }
 0x213   : > { %p794_p6 = scmp.ne.s32.totalorder %s1105_s8, %s793_s17  ;;  %p798_p7 = scmp.lt.u32.totalorder %s1105_s8, %s1155_s3 }
 0x214   : > { %p799_p10 = scmp.lt.u32.totalorder %s797_s28, %s793_s17  ;;  %p801_p4 = scmp.lt.u32.totalorder %s793_s17, %s1105_s8 }
 0x215   : > { %p795_p12 = pnand %p794_p6, %p1166_p11 }
 0x216   : > { %p800_p2 = por %p799_p10, %p798_p7 }
 0x217   : > { %p796_p13 = pneg %p795_p12 }
 0x218   : > { %p802_p5 = por %p801_p4, %p800_p2 }
 0x21a   : > { %p803_p8 = pnand %p802_p5, %p796_p13 }
 0x21c   : > { %806 = shalt.err (!%p803_p8)
}
 0x21d   : > { %621 = dma.vmem_to_hbm [thread:$0]  (%p1166_p11), %s1107_s26, 128, %s1105_s8, %s435_s22  }
 0x21e PF: > { %s494_s11 = sand.u32 1, %s837_s18   ;;  %p1167_p9 = scmp.ne.s32.totalorder %s1162_s6, 0 }
 0x21f   : > { %p1168_p0 = scmp.ge.s32.totalorder %s849_s21, 2  ;;  %s495_s16 = scalar_lea.sflag [#allocation4], %s494_s11 }
 0x221   : > { %p632_p1 = pnand %p1168_p0, %p1167_p9 }
 0x223   : > { %828 = dma.done.wait (!%p632_p1), %s495_s16, 128  }
 0x224   : > { %830 = vsyncadd (!%p632_p1), %s495_s16, 4294967168  ;;  %s503_s15 = sand.u32 1, %s605_s23  }
 0x225   : > { %s504_s7 = scalar_lea.sflag [#allocation7], %s503_s15 }
 0x226   : > { %832 = dma.done.wait (!%p632_p1), %s504_s7, 32  }
 0x227   : > { %834 = vsyncadd (!%p632_p1), %s504_s7, 4294967264  ;;  %p22_p11 = scmp.ge.s32.totalorder %s917_s24, 4   ;;  %s1169_s18 = smov %s841_s19 }
 0x228   : > { %s1170_s19 = smov %s845_s20  ;;  %s1171_s20 = smov %s929_s27 }
 0x229   : > { %s1172_s21 = smov %s917_s24  ;;  %24 = sbr.rel (!%p22_p11) target bundleno = 7 (0x7), region = 109 }
 0x230   :  { %516 = vsyncpa [#allocation3], 1 }
 0x231   :  { %518 = vsyncpa [#allocation3 + $0x1], 1 }
 0x232   :  { %519 = vsyncpa [#allocation4], 1 }
 0x233   :  { %521 = vsyncpa [#allocation4 + $0x1], 1 }
 0x234   :  { %522 = vsyncpa [#allocation7], 1 }
 0x235   :  { %524 = vsyncpa [#allocation7 + $0x1], 1 }

</bundles_post_ra>
